<compile_context>
chip_gen: v6e
topology: v6e:2x2x1
jax: 0.10.0
libtpu: 0.0.40
codegen_flags: <defaults>
</compile_context>

<pallas_src>
import math
import functools

import jax
import jax.numpy as jnp
from jax import lax
from jax.experimental import pallas as pl
from jax.experimental.pallas import tpu as pltpu


def _pick_tile(dim, target, unit):
    """Largest block size <= target that is a multiple of `unit` and divides
    `dim` evenly; falls back to the full dim (always legal)."""
    if dim <= target:
        return dim
    t = (target // unit) * unit
    while t >= unit:
        if dim % t == 0:
            return t
        t -= unit
    return dim


# ---------------------------------------------------------------------------
# Kernel 1: fused QKV projection   (B, T, C) @ (C, 3C) + (1, 3C) -> (B, T, 3C)
# ---------------------------------------------------------------------------
def _qkv_proj_kernel(x_ref, w_ref, b_ref, o_ref, acc_ref):
    k_idx = pl.program_id(3)

    @pl.when(k_idx == 0)
    def _init():
        acc_ref[...] = jnp.zeros_like(acc_ref)

    acc_ref[...] += jnp.dot(
        x_ref[...], w_ref[...], preferred_element_type=jnp.float32)

    @pl.when(k_idx == pl.num_programs(3) - 1)
    def _finalize():
        o_ref[...] = (acc_ref[...] + b_ref[...]).astype(o_ref.dtype)


# ---------------------------------------------------------------------------
# Kernel 2: attention on the fused qkv tile of one batch element.
# ---------------------------------------------------------------------------
def _attention_kernel(qkv_ref, o_ref, *, n_heads, scale, causal_mask):
    T = qkv_ref.shape[0]
    C = qkv_ref.shape[1] // 3
    dh = C // n_heads

    qkv = qkv_ref[...]                                        # (T, 3C) bf16
    # Split order in the reference Linear: k, q, v.
    k = qkv[:, :C]
    # Fold 1/sqrt(dh) into q: T*dh multiplies instead of T*T on the scores.
    q = (qkv[:, C:2 * C].astype(jnp.float32) * scale).astype(jnp.bfloat16)
    v = qkv[:, 2 * C:]

    if causal_mask:
        row = lax.broadcasted_iota(jnp.int32, (T, T), 0)
        col = lax.broadcasted_iota(jnp.int32, (T, T), 1)
        keep = col <= row                                     # hoisted once

    outs = []
    for h in range(n_heads):                                  # static unroll
        sl = slice(h * dh, (h + 1) * dh)
        k_h, q_h, v_h = k[:, sl], q[:, sl], v[:, sl]
        # Reference computes k @ q^T: contract dh of both operands directly.
        s = lax.dot_general(
            k_h, q_h,
            dimension_numbers=(((1,), (1,)), ((), ())),
            preferred_element_type=jnp.float32)               # (T, T) fp32
        if causal_mask:
            s = jnp.where(keep, s, -jnp.inf)
        m = jnp.max(s, axis=-1, keepdims=True)
        e = jnp.exp(s - m)
        p = e * pl.reciprocal(jnp.sum(e, axis=-1, keepdims=True), approx=True)
        outs.append(jnp.dot(p.astype(jnp.bfloat16), v_h,
                            preferred_element_type=jnp.float32))
    # One lane-dense (T, C) store, already in final (B, T, C) head ordering.
    o_ref[...] = jnp.concatenate(outs, axis=-1).astype(o_ref.dtype)


# ---------------------------------------------------------------------------
# Wrapper matching MultiHeadedAttention.forward(x, mask)
# ---------------------------------------------------------------------------
def multi_headed_attention(x, weight, bias, n_heads, mask=False):
    B, T, C = x.shape
    assert C % n_heads == 0
    dh = C // n_heads

    # One-time glue: nn.Linear weight (3C, C) -> (C, 3C); feed the MXU bf16.
    w_t = weight.T.astype(jnp.bfloat16)
    x_b = x.astype(jnp.bfloat16)
    b2 = bias.reshape(1, 3 * C).astype(jnp.float32)

    # ---- kernel 1: fused QKV projection with N/K tiling ----
    tm = _pick_tile(T, 256, 8)
    tk = _pick_tile(C, 512, 128)
    tn = _pick_tile(3 * C, 512, 128)
    grid = (B, T // tm, (3 * C) // tn, C // tk)

    qkv = pl.pallas_call(
        _qkv_proj_kernel,
        out_shape=jax.ShapeDtypeStruct((B, T, 3 * C), jnp.bfloat16),
        grid=grid,
        in_specs=[
            pl.BlockSpec((None, tm, tk), lambda b, i, j, k: (b, i, k)),
            pl.BlockSpec((tk, tn), lambda b, i, j, k: (k, j)),
            pl.BlockSpec((1, tn), lambda b, i, j, k: (0, j)),
        ],
        out_specs=pl.BlockSpec((None, tm, tn), lambda b, i, j, k: (b, i, j)),
        scratch_shapes=[pltpu.VMEM((tm, tn), jnp.float32)],
        compiler_params=pltpu.CompilerParams(
            dimension_semantics=("parallel", "parallel", "parallel",
                                 "arbitrary")),
    )(x_b, w_t, b2)

    # ---- kernel 2: attention, grid over batch; all heads per grid step ----
    kernel = functools.partial(
        _attention_kernel, n_heads=n_heads, scale=1.0 / math.sqrt(dh),
        causal_mask=bool(mask))
    out = pl.pallas_call(
        kernel,
        out_shape=jax.ShapeDtypeStruct((B, T, C), jnp.float32),
        grid=(B,),
        in_specs=[pl.BlockSpec((None, T, 3 * C), lambda b: (b, 0, 0))],
        out_specs=pl.BlockSpec((None, T, C), lambda b: (b, 0, 0)),
        compiler_params=pltpu.CompilerParams(dimension_semantics=("parallel",)),
    )(qkv)
    # TODO(synk): for large T, tile the key axis flash-style (online softmax
    # with m/l/acc VMEM scratch) so the (T, T) score tile never exceeds VMEM
    # (mandatory on v7x's 64 MiB at T >= 4096).
    return out


# ---------------------------------------------------------------------------
# Plain-JAX replica of the PyTorch forward for verification.
# ---------------------------------------------------------------------------
def reference(x, weight, bias, n_heads, mask=False):
    B, T, C = x.shape
    dh = C // n_heads
    qkv = x @ weight.T + bias
    k, q, v = jnp.split(qkv, 3, axis=-1)
    k = k.reshape(B, T, n_heads, dh).transpose(0, 2, 1, 3)
    q = q.reshape(B, T, n_heads, dh).transpose(0, 2, 1, 3)
    v = v.reshape(B, T, n_heads, dh).transpose(0, 2, 1, 3)
    kq = jnp.einsum("bhid,bhjd->bhij", k, q) / math.sqrt(dh)
    if mask:
        tri = jnp.tril(jnp.ones((T, T), jnp.float32))
        kq = jnp.where(tri == 0, -jnp.inf, kq)
    p = jax.nn.softmax(kq, axis=-1)
    out = jnp.einsum("bhij,bhjd->bhid", p, v)
    return out.transpose(0, 2, 1, 3).reshape(B, T, C)


if __name__ == "__main__":
    # Config: d_model=32, n_heads=4 (dh=8), seq T=8, batch B=2.
    B, T, C, H = 2, 8, 32, 4

    key = jax.random.PRNGKey(0)
    kx, kw, kb = jax.random.split(key, 3)
    x = jax.random.normal(kx, (B, T, C), dtype=jnp.float32)
    weight = jax.random.normal(kw, (3 * C, C), dtype=jnp.float32) * 0.02
    bias = jax.random.normal(kb, (3 * C,), dtype=jnp.float32) * 0.02

    # mask=False (default path)
    out = multi_headed_attention(x, weight, bias, H, mask=False)
    out = jax.block_until_ready(out)
    ref = reference(x, weight, bias, H, mask=False)
    assert out.shape == (B, T, C)
    # bf16 MXU operands with fp32 accumulation -> loosened tolerance.
    assert jnp.allclose(out, ref, rtol=2e-2, atol=2e-2), "mismatch (mask=False)"

    # mask=True (causal path)
    out_m = jax.block_until_ready(
        multi_headed_attention(x, weight, bias, H, mask=True))
    ref_m = reference(x, weight, bias, H, mask=True)
    assert jnp.allclose(out_m, ref_m, rtol=2e-2, atol=2e-2), "mismatch (mask=True)"

    print("KERNEL_OK")
</pallas_src>

<mosaic_0001>
module attributes {stable_mosaic.version = 11 : i64} {
  func.func @_qkv_proj_kernel(%arg0: i32, %arg1: i32, %arg2: i32, %arg3: i32, %arg4: memref<1x8x32xbf16, #tpu.memory_space<vmem>>, %arg5: memref<32x96xbf16, #tpu.memory_space<vmem>>, %arg6: memref<1x96xf32, #tpu.memory_space<vmem>>, %arg7: memref<1x8x96xbf16, #tpu.memory_space<vmem>>, %arg8: memref<8x96xf32, #tpu.memory_space<vmem>>) attributes {dimension_semantics = [#tpu.dimension_semantics<parallel>, #tpu.dimension_semantics<parallel>, #tpu.dimension_semantics<parallel>, #tpu.dimension_semantics<arbitrary>], iteration_bounds = array<i64: 2, 1, 1, 1>, scalar_prefetch = 0 : i64, scratch_operands = 1 : i64, tpu.core_type = #tpu.core_type<tc>, window_params = [{transform_indices = @transform_0, window_bounds = array<i64: 1, 8, 32>}, {transform_indices = @transform_1, window_bounds = array<i64: 32, 96>}, {transform_indices = @transform_2, window_bounds = array<i64: 1, 96>}, {transform_indices = @transform_3, window_bounds = array<i64: 1, 8, 96>}]} {
    %c0_i32 = arith.constant 0 : i32
    %0 = arith.cmpi eq, %arg3, %c0_i32 : i32
    %1 = arith.extui %0 : i1 to i32
    %c0_i32_0 = arith.constant 0 : i32
    %2 = arith.cmpi ne, %1, %c0_i32_0 : i32
    scf.if %2 {
      %cst_11 = arith.constant 0.000000e+00 : f32
      %13 = vector.broadcast %cst_11 : f32 to vector<8x96xf32>
      %c0_12 = arith.constant 0 : index
      %c0_13 = arith.constant 0 : index
      %14 = vector.load %arg8[%c0_12, %c0_13] : memref<8x96xf32, #tpu.memory_space<vmem>>, vector<8x96xf32>
      tpu.vector_store %arg8[%c0_12, %c0_13], %13 {strides = array<i32>} : memref<8x96xf32, #tpu.memory_space<vmem>>, vector<8x96xf32>,
    } else {
    }
    %c0 = arith.constant 0 : index
    %c0_1 = arith.constant 0 : index
    %3 = vector.load %arg8[%c0, %c0_1] : memref<8x96xf32, #tpu.memory_space<vmem>>, vector<8x96xf32>
    %c0_2 = arith.constant 0 : index
    %c0_3 = arith.constant 0 : index
    %c0_4 = arith.constant 0 : index
    %4 = vector.load %arg4[%c0_2, %c0_3, %c0_4] : memref<1x8x32xbf16, #tpu.memory_space<vmem>>, vector<1x8x32xbf16>
    %5 = vector.shape_cast %4 : vector<1x8x32xbf16> to vector<8x32xbf16>
    %c0_5 = arith.constant 0 : index
    %c0_6 = arith.constant 0 : index
    %6 = vector.load %arg5[%c0_5, %c0_6] : memref<32x96xbf16, #tpu.memory_space<vmem>>, vector<32x96xbf16>
    %cst = arith.constant dense<0.000000e+00> : vector<8x96xf32>
    %7 = tpu.matmul %5, %6, %cst {dimension_numbers = #tpu.dot_dimension_numbers<[1], [0], [0], [1], [0, 0, 1, 1], [], []>} : vector<8x32xbf16>, vector<32x96xbf16>, vector<8x96xf32> -> vector<8x96xf32>
    %8 = arith.addf %3, %7 : vector<8x96xf32>
    %c0_7 = arith.constant 0 : index
    %c0_8 = arith.constant 0 : index
    %9 = vector.load %arg8[%c0_7, %c0_8] : memref<8x96xf32, #tpu.memory_space<vmem>>, vector<8x96xf32>
    tpu.vector_store %arg8[%c0_7, %c0_8], %8 {strides = array<i32>} : memref<8x96xf32, #tpu.memory_space<vmem>>, vector<8x96xf32>,
    %c0_i32_9 = arith.constant 0 : i32
    %10 = arith.cmpi eq, %arg3, %c0_i32_9 : i32
    %11 = arith.extui %10 : i1 to i32
    %c0_i32_10 = arith.constant 0 : i32
    %12 = arith.cmpi ne, %11, %c0_i32_10 : i32
    scf.if %12 {
      %c0_11 = arith.constant 0 : index
      %c0_12 = arith.constant 0 : index
      %13 = vector.load %arg8[%c0_11, %c0_12] : memref<8x96xf32, #tpu.memory_space<vmem>>, vector<8x96xf32>
      %c0_13 = arith.constant 0 : index
      %c0_14 = arith.constant 0 : index
      %14 = vector.load %arg6[%c0_13, %c0_14] : memref<1x96xf32, #tpu.memory_space<vmem>>, vector<1x96xf32>
      %15 = vector.broadcast %14 : vector<1x96xf32> to vector<8x96xf32>
      %16 = arith.addf %13, %15 : vector<8x96xf32>
      %17 = arith.truncf %16 : vector<8x96xf32> to vector<8x96xbf16>
      %c0_15 = arith.constant 0 : index
      %c0_16 = arith.constant 0 : index
      %c0_17 = arith.constant 0 : index
      %18 = vector.load %arg7[%c0_15, %c0_16, %c0_17] : memref<1x8x96xbf16, #tpu.memory_space<vmem>>, vector<1x8x96xbf16>
      %19 = vector.shape_cast %18 : vector<1x8x96xbf16> to vector<8x96xbf16>
      %20 = vector.shape_cast %17 : vector<8x96xbf16> to vector<1x8x96xbf16>
      tpu.vector_store %arg7[%c0_15, %c0_16, %c0_17], %20 {strides = array<i32>} : memref<1x8x96xbf16, #tpu.memory_space<vmem>>, vector<1x8x96xbf16>,
    } else {
    }
    return
  }
  func.func @transform_0(%arg0: i32, %arg1: i32, %arg2: i32, %arg3: i32) -> (i32, i32, i32) {
    %c0_i32 = arith.constant 0 : i32
    return %arg0, %arg1, %arg3 : i32, i32, i32
  }
  func.func @transform_1(%arg0: i32, %arg1: i32, %arg2: i32, %arg3: i32) -> (i32, i32) {
    %c0_i32 = arith.constant 0 : i32
    return %arg3, %arg2 : i32, i32
  }
  func.func @transform_2(%arg0: i32, %arg1: i32, %arg2: i32, %arg3: i32) -> (i32, i32) {
    %c0_i32 = arith.constant 0 : i32
    %c0_i32_0 = arith.constant 0 : i32
    return %c0_i32, %arg2 : i32, i32
  }
  func.func @transform_3(%arg0: i32, %arg1: i32, %arg2: i32, %arg3: i32) -> (i32, i32, i32) {
    %c0_i32 = arith.constant 0 : i32
    return %arg0, %arg1, %arg2 : i32, i32, i32
  }
}

</mosaic_0001>

<bundles_post_ra>
// kernel: tpu_custom_call.1
= control target key start
LH: loop header
LB: loop body
LE: loop exit
PB: predicated region body
PF: predicated region fallthrough
CT: control target
= control target key end

     0   :  { %8 = vsyncpa [#allocation4], 0  ;;  %s933_s0 = inlined_call_operand.hbm [shape: bf16[2,8,32], index: 0, kind: input, shape index: {}]   ;;  %s934_s1 = inlined_call_operand.hbm [shape: bf16[32,96], index: 1, kind: input, shape index: {}]   ;;  %s935_s2 = inlined_call_operand.vmem [shape: f32[1,96], index: 2, kind: input, shape index: {}]   ;;  %s936_s3 = inlined_call_operand.hbm [shape: bf16[2,8,96], index: 3, kind: output, shape index: {}]  }
   0x1   :  { %10 = vsyncpa [#allocation4 + $0x1], 0 }
   0x2   :  { %11 = vsyncpa [#allocation7], 0 }
   0x3   :  { %12 = vsyncpa [#allocation5], 0 }
   0x4   :  { %14 = vsyncpa [#allocation5 + $0x1], 0  ;;  %s757_s12 = smov 0   ;;  %s759_s13 = smov 0  }
   0x5   :  { %s761_s14 = smov 0   ;;  %s763_s15 = smov 0  }
   0x6   :  { %s765_s16 = smov 0   ;;  %s767_s17 = smov 0  }
   0x7 LB: > { %s480_s18 = sadd.s32 4294967295, %s728_s17   ;;  %s481_s19 = sadd.s32 4294967294, %s728_s17   ;;  %s728_s17 = sphi %s767_s17, %s20_s17   ;;  %s724_s16 = sphi %s765_s16, %s954_s16   ;;  %s720_s15 = sphi %s763_s15, %s953_s15   ;;  %s716_s14 = sphi %s761_s14, %s952_s14   ;;  %s712_s13 = sphi %s759_s13, %s951_s13   ;;  %s708_s12 = sphi %s757_s12, %s950_s12  }
   0x8   : > { %p70_p0 = scmp.ne.s32.totalorder %s712_s13, %s708_s12  ;;  %p791_p1 = scmp.eq.s32.totalorder %s480_s18, 0 }
   0x9   : > { %p795_p2 = scmp.eq.s32.totalorder %s480_s18, 1  ;;  %p158_p3 = scmp.eq.s32.totalorder %s481_s19, 1 }
   0xa   : > { %p801_p4 = por %p791_p1, %p70_p0  ;;  %p482_p5 = scmp.ge.s32.totalorder %s728_s17, 1 }
   0xb   : > { %p806_p6 = por %p158_p3, %p70_p0  ;;  %p165_p7 = scmp.lt.s32.totalorder %s728_s17, 3 }
   0xc   : > { %s940_s22 = scalar_select %p801_p4, 1, 0 }
   0xd   : > { %s941_s23 = scalar_select %p806_p6, 1, 0 }
   0xe   : > { %p811_p8 = pnand %p482_p5, %p165_p7  ;;  %s730_s25 = smov [#allocation6]  }
   0xf   : > { %s181_s26 = sshll.u32 %s730_s25, 4  ;;  %s46_s28 = sadd.s32 1, %s724_s16  ;;  %s182_s26 = int_to_ptr.vmem [resolvable:$true] %s181_s26 }
  0x10   : > { %p519_p9 = pneg %p811_p8  ;;  %s601_s29 = scalar_lea.vmem %s182_s26, 256 }
  0x11   : > { %p602_p13 = scmp.ne.s32.totalorder %s182_s26, %s601_s29  ;;  %p609_p5 = scmp.lt.s32.totalorder %s182_s26, %s182_s26 }
  0x12   : > { %p820_p11 = pnand %p519_p9, %p791_p1  ;;  %p610_p7 = scmp.lt.s32.totalorder %s601_s29, %s601_s29 }
  0x14   : > { %p592_p12 = pneg %p820_p11  ;;  %p611_p6 = por %p610_p7, %p609_p5 }
  0x16   : > { %p604_p0 = pnand %p602_p13, %p592_p12 }
  0x18   : > { %p605_p3 = pneg %p604_p0 }
  0x1a   : > { %p612_p4 = pnand %p611_p6, %p605_p3 }
  0x1c   : > { %615 = shalt.err (!%p612_p4)
}
  0x1d   : > { %s731_s30 = smov 64   ;;  %s732_s4 = smov 4  }
  0x1e   : > { %522 = dma.hbm_to_vmem [thread:$0]  (!%p820_p11), %s934_s1, 256, %s182_s26, [#allocation7], %s731_s30, %s731_s30, %s732_s4  }
  0x1f   : > { %p48_p6 = scmp.ge.s32.totalorder %s46_s28, 2  ;;  %s57_s7 = sadd.s32 1, %s716_s14 }
  0x20   : > { %p64_p4 = scmp.ne.s32.totalorder %s716_s14, %s712_s13  ;;  %p65_p9 = scmp.eq.s32.totalorder %s728_s17, 0 }
  0x21   : > { %s956_s28 = smov (%p48_p6, %s46_s28), 0  ;;  %p532_p0 = scmp.lt.s32.totalorder %s728_s17, 2 }
  0x22   : > { %p838_p12 = por %p65_p9, %p64_p4  ;;  %p844_p13 = por %p795_p2, %p64_p4 }
  0x23   : > { %s50_s10 = ssub.s32 %s724_s16, %s956_s28  ;;  %s201_s11 = sand.u32 1, %s716_s14  }
  0x24   : > { %p55_p11 = scmp.eq.s32.totalorder %s50_s10, 0  ;;  %s486_s18 = sshll.u32 %s201_s11, 2 }
  0x25   : > { %s487_s25 = sshll.u32 %s724_s16, 6  ;;  %s205_s30 = scalar_lea.vmem [#allocation3], %s486_s18 }
  0x26   : > { %s853_s19 = scalar_select %p55_p11, %s716_s14, %s57_s7  }
  0x27   : > { %s212_s29 = scalar_lea.hbm %s933_s0, %s487_s25  ;;  %s214_s4 = sshll.u32 %s205_s30, 4  ;;  %s215_s4 = int_to_ptr.vmem [resolvable:$true] %s214_s4 }
  0x28   : > { %p861_p2 = pnand %p532_p0, %p838_p12  ;;  %s202_s5 = scalar_lea.sflag [#allocation4], %s201_s11 }
  0x29   : > { %s629_s6 = scalar_lea.vmem %s215_s4, 64  ;;  %s733_s7 = smov [#allocation3]  }
  0x2a   : > { %p618_p3 = pneg %p861_p2  ;;  %p630_p5 = scmp.ne.s32.totalorder %s215_s4, %s629_s6 }
  0x2b   : > { %s634_s10 = sshll.u32 %s733_s7, 4  ;;  %s635_s10 = int_to_ptr.vmem [resolvable:$false] %s634_s10 }
  0x2c   : > { %p632_p7 = pnand %p630_p5, %p618_p3  ;;  %s636_s25 = scalar_lea.vmem %s635_s10, 128 }
  0x2d   : > { %p637_p4 = scmp.lt.s32.totalorder %s215_s4, %s635_s10  ;;  %p638_p9 = scmp.lt.s32.totalorder %s636_s25, %s629_s6 }
  0x2e   : > { %p633_p6 = pneg %p632_p7 }
  0x2f   : > { %p639_p11 = por %p638_p9, %p637_p4 }
  0x31   : > { %p640_p10 = pnand %p639_p11, %p633_p6 }
  0x33   : > { %643 = shalt.err (!%p640_p10)
}
  0x34   : > { %526 = dma.hbm_to_vmem [thread:$0]  (!%p861_p2), %s212_s29, 64, %s215_s4, %s202_s5  }
  0x35   : > { %223 = sbr.rel (%p811_p8) target bundleno = 290 (0x122), region = 32  ;;  %s872_s8 = sand.u32 (!%p811_p8), 1, %s712_s13  }
  0x36   : > { %s489_s11 = sshll.u32 (!%p811_p8), %s872_s8, 2  ;;  %s226_s18 = scalar_lea.sflag (!%p811_p8), [#allocation4], %s872_s8 }
  0x37   : > { %s229_s26 = scalar_lea.vmem (!%p811_p8), [#allocation3], %s489_s11  ;;  %p947_p12 = scmp.ne.s32.totalorder (!%p811_p8), %s940_s22, 0 }
  0x3a   : > { %695 = dma.done.wait (%p947_p12), %s226_s18, 64  }
  0x3b   : > { %697 = vsyncadd (%p947_p12), %s226_s18, 4294967232 }
  0x3c   : > { %699 = dma.done.wait (%p791_p1), [#allocation7], 256  }
  0x3d   : > { %701 = vsyncadd (%p791_p1), [#allocation7], 4294967040  ;;  %vm268_vm0 = vcmask 785408   ;;  %v734_v0 = vmov 0.0   ;;  %vm735_vm1 = vmmov 0   ;;  %v588_v1 = vld [vmem:[#allocation6 + $0x8] sm:$0xff]  }
  0x3e   : > { %269 = vst.msk [vmem:[#allocation2] sm:$0xff] %vm268_vm0, %v734_v0  ;;  %503 = vmatprep.subr.bf16.mxu0 %v734_v0  ;;  %507 = vmatprep.mubr.msk.bf16.mxu0 %vm735_vm1, %v734_v0  ;;  %v589_v2 = vld [vmem:[#allocation6] sm:$0xff]   ;;  %v271_v3 = vld [vmem:[%s229_s26] sm:$0xf]  ;;  %vm288_vm2 = vcmask 261120   ;;  %s497_s24 = sshll.u32 %s720_s15, 6 }
  0x3f   : > { %504 = vmatpush3.bf16.msra.mxu0 %v588_v1  ;;  %v495_v10 = vld [vmem:[%s935_s2] ss:$0 sm:$0xff]  ;;  %s258_s27 = scalar_lea.vmem [#allocation8], %s489_s11  ;;  %vm348_vm3 = vcmask 781312   ;;  %s364_s21 = scalar_lea.hbm %s936_s3, %s497_s24 }
  0x40   : > { %505 = vmatprep.subr.bf16.mxu0 %v734_v0  ;;  %s366_s29 = sshll.u32 %s258_s27, 4  ;;  %s351_s5 = scalar_lea.sflag [#allocation5], %s872_s8  ;;  %s367_s29 = int_to_ptr.vmem [resolvable:$true] %s366_s29 }
  0x41   : > { %s644_s6 = scalar_lea.vmem %s367_s29, 64  ;;  %s736_s7 = smov [#allocation8]  }
  0x42   : > { %p645_p1 = scmp.ne.s32.totalorder %s367_s29, %s644_s6  ;;  %s648_s15 = sshll.u32 %s736_s7, 4  ;;  %s649_s15 = int_to_ptr.vmem [resolvable:$false] %s648_s15 }
  0x43   : > { %506 = vmatpush3.bf16.msra.mxu0 %v589_v2  ;;  %s650_s10 = scalar_lea.vmem %s649_s15, 128  ;;  %p651_p0 = scmp.lt.s32.totalorder %s367_s29, %s649_s15 }
  0x44   : > { %p646_p8 = pnand %p645_p1, %p844_p13  ;;  %p652_p2 = scmp.lt.s32.totalorder %s650_s10, %s644_s6 }
  0x45   : > { %v270_v4 = vld [vmem:[#allocation2] sm:$0xff] }
  0x46   : > { %508 = vmatmul.mubr.msk.bf16.vlgmr.msra.gmra.mxu0 %vm288_vm2, %v271_v3  ;;  %p647_p10 = pneg %p646_p8  ;;  %p653_p3 = por %p652_p2, %p651_p0 }
  0x48   : > { %p654_p5 = pnand %p653_p3, %p647_p10 }
 0x106   : > { %v326_v5 = vpop.f32.mrf.mxu0 }
 0x107   : > { %v332_v6 = vadd.f32 %v326_v5, %v270_v4 }
 0x108   : > { %v509_v7 = vpop.f32.mrf.mxu0 }
 0x109   : > { %334 = vst.msk [vmem:[#allocation2] sm:$0xff] %vm268_vm0, %v332_v6 }
 0x10a   : > { %v329_v8 = vpop.f32.mrf.mxu0 }
 0x10c   : > { %v510_v9 = vpop.f32.mrf.mxu0 }
 0x110   : > { %v338_v11 = vld [vmem:[#allocation2] sm:$0xff] }
 0x111   : > { %v346_v12 = vadd.f32 %v495_v10, %v338_v11 }
 0x113   : > { %v347_v13 = vpack.c.bf16 %v346_v12, %v346_v12 }
 0x115   : > { %349 = vst.msk [vmem:[%s258_s27] sm:$0xf] %vm348_vm3, %v347_v13 }
 0x116   : > { %657 = shalt.err (!%p654_p5)
}
 0x117   : > { %s658_s25 = scalar_lea.hbm %s364_s21, 64  ;;  %s662_s18 = scalar_lea.hbm %s936_s3, 128 }
 0x118   : > { %p659_p7 = scmp.ne.s32.totalorder %s364_s21, %s658_s25  ;;  %p663_p9 = scmp.lt.s32.totalorder %s364_s21, %s936_s3 }
 0x119   : > { %p664_p11 = scmp.lt.s32.totalorder %s662_s18, %s658_s25 }
 0x11a   : > { %p660_p6 = pnand %p659_p7, %p844_p13 }
 0x11b   : > { %p665_p12 = por %p664_p11, %p663_p9 }
 0x11c   : > { %p661_p4 = pneg %p660_p6 }
 0x11e   : > { %p666_p1 = pnand %p665_p12, %p661_p4 }
 0x120   : > { %669 = shalt.err (!%p666_p1)
}
 0x121   : > { %517 = dma.vmem_to_hbm [thread:$0]  (%p844_p13), %s367_s29, 64, %s364_s21, %s351_s5  }
 0x122 PF: > { %s378_s22 = sand.u32 1, %s708_s12   ;;  %p948_p8 = scmp.ne.s32.totalorder %s941_s23, 0 }
 0x123   : > { %p949_p10 = scmp.ge.s32.totalorder %s728_s17, 2  ;;  %s379_s24 = scalar_lea.sflag [#allocation5], %s378_s22 }
 0x125   : > { %p528_p0 = pnand %p949_p10, %p948_p8 }
 0x127   : > { %p529_p2 = pneg %p528_p0 }
 0x129   : > { %703 = dma.done.wait (%p529_p2), %s379_s24, 64  }
 0x12a   : > { %705 = vsyncadd (%p529_p2), %s379_s24, 4294967232  ;;  %s20_s17 = sadd.s32 1, %s728_s17   ;;  %s950_s12 = smov %s712_s13 }
 0x12b   : > { %p17_p3 = scmp.ge.s32.totalorder %s20_s17, 4   ;;  %s951_s13 = smov %s716_s14 }
 0x12c   : > { %s952_s14 = smov %s853_s19  ;;  %s953_s15 = smov %s724_s16 }
 0x12d   : > { %s954_s16 = smov %s956_s28  ;;  %19 = sbr.rel (!%p17_p3) target bundleno = 7 (0x7), region = 93 }
 0x132   :  { %384 = vsyncpa [#allocation4], 1 }
 0x133   :  { %386 = vsyncpa [#allocation4 + $0x1], 1 }
 0x134   :  { %387 = vsyncpa [#allocation7], 1 }
 0x135   :  { %388 = vsyncpa [#allocation5], 1 }
 0x136   :  { %390 = vsyncpa [#allocation5 + $0x1], 1 }

</bundles_post_ra>
